<compile_context>
chip_gen: v5e
topology: v5e:2x2
jax: 0.10.0
libtpu: 0.0.40
codegen_flags: <defaults>
</compile_context>

<pallas_src>
import functools
import numpy as np
import jax
import jax.numpy as jnp
from jax.experimental import pallas as pl
from jax.experimental.pallas import tpu as pltpu


def _round_up(x, m):
    return ((x + m - 1) // m) * m


def _pick_row_tile(rows, bytes_per_row, budget=1 << 21):
    """Largest divisor of `rows` whose block stays under `budget` bytes."""
    th = max(1, min(rows, budget // max(bytes_per_row, 1)))
    while rows % th:
        th -= 1
    return th


# ----------------------------------------------------------------------------
# Fused matmul + bias + activation kernel (conv / fconn / upsample hot path)
# ----------------------------------------------------------------------------
def _matmul_bias_act_kernel(a_ref, b_ref, bias_ref, o_ref, acc_ref, *, activation):
    @pl.when(pl.program_id(2) == 0)
    def _init():
        acc_ref[...] = jnp.zeros_like(acc_ref)

    acc_ref[...] += jnp.dot(a_ref[...], b_ref[...], preferred_element_type=jnp.float32)

    @pl.when(pl.program_id(2) == pl.num_programs(2) - 1)
    def _finalize():
        y = acc_ref[...] + bias_ref[...]
        if activation == "relu":
            y = jnp.maximum(y, 0.0)
        elif activation == "sigmoid":
            y = jax.nn.sigmoid(y)
        o_ref[...] = y.astype(o_ref.dtype)


@functools.partial(jax.jit, static_argnames=("activation", "out_dtype"))
def matmul_bias_act(a, b, bias, *, activation="none", out_dtype=jnp.float32):
    """out = act(a @ b + bias); a:(M,K), b:(K,N), bias:(N,). f32 accumulation."""
    M, K = a.shape
    K2, N = b.shape
    assert K == K2

    # Tile selection: big tiles for the MXU, full-dim blocks for small dims (no padding).
    tm = 256 if M >= 256 else _round_up(M, 8)
    Mp = _round_up(M, tm)
    if N >= 256:
        tn = 256
    elif N >= 128:
        tn = 128
    else:
        tn = N                      # full-dim block (last-dim exception)
    Np = _round_up(N, tn)
    if K <= 2304:
        tk, Kp = K, K               # single reduction step, no K padding
    else:
        tk = 512
        Kp = _round_up(K, tk)

    a_p = a if (Mp == M and Kp == K) else jnp.pad(a, ((0, Mp - M), (0, Kp - K)))
    b_p = b if (Kp == K and Np == N) else jnp.pad(b, ((0, Kp - K), (0, Np - N)))
    bias2 = bias.reshape(1, N).astype(jnp.float32)
    bias_p = bias2 if Np == N else jnp.pad(bias2, ((0, 0), (0, Np - N)))

    grid = (Mp // tm, Np // tn, Kp // tk)
    out = pl.pallas_call(
        functools.partial(_matmul_bias_act_kernel, activation=activation),
        out_shape=jax.ShapeDtypeStruct((Mp, Np), out_dtype),
        grid_spec=pltpu.PrefetchScalarGridSpec(
            num_scalar_prefetch=0,
            grid=grid,
            in_specs=[
                pl.BlockSpec((tm, tk), lambda i, j, k: (i, k)),
                pl.BlockSpec((tk, tn), lambda i, j, k: (k, j)),
                pl.BlockSpec((1, tn), lambda i, j, k: (0, j)),
            ],
            out_specs=pl.BlockSpec((tm, tn), lambda i, j, k: (i, j)),
            scratch_shapes=[pltpu.VMEM((tm, tn), jnp.float32)],
        ),
        compiler_params=pltpu.CompilerParams(
            dimension_semantics=("parallel", "parallel", "arbitrary")
        ),
    )(a_p, b_p, bias_p)
    return out[:M, :N]


# ----------------------------------------------------------------------------
# 2x2 / stride-2 max pooling: 2x2 reduction done in-kernel (no strided HBM slices)
# ----------------------------------------------------------------------------
def _maxpool_kernel(x_ref, o_ref):
    # x_ref block: (TH, 2, Wo, 2, C); o_ref block: (TH, Wo, C)
    a = jnp.max(x_ref[:, 0, :, :, :], axis=2)   # (TH, Wo, C) -- top row of each 2x2 window
    b = jnp.max(x_ref[:, 1, :, :, :], axis=2)   # (TH, Wo, C) -- bottom row
    o_ref[...] = jnp.maximum(a, b)


def maxpool2x2(x):  # x: NHWC, even H/W
    n, h, w, c = x.shape
    ho, wo = h // 2, w // 2
    rows = n * ho
    # Row-major split reshape: no data movement, windows become explicit axes.
    x5 = x.reshape(rows, 2, wo, 2, c)
    bytes_per_row = 2 * wo * 2 * c * x.dtype.itemsize
    th = _pick_row_tile(rows, bytes_per_row)
    out = pl.pallas_call(
        _maxpool_kernel,
        out_shape=jax.ShapeDtypeStruct((rows, wo, c), x.dtype),
        grid=(rows // th,),
        in_specs=[pl.BlockSpec((th, 2, wo, 2, c), lambda i: (i, 0, 0, 0, 0))],
        out_specs=pl.BlockSpec((th, wo, c), lambda i: (i, 0, 0)),
        compiler_params=pltpu.CompilerParams(dimension_semantics=("parallel",)),
    )(x5)
    return out.reshape(n, ho, wo, c)


# ----------------------------------------------------------------------------
# BatchNorm2d (training-mode batch statistics, PyTorch default) + ReLU
# ----------------------------------------------------------------------------
def _bn_relu_kernel(x_ref, m_ref, s_ref, b_ref, o_ref):
    x = x_ref[...].astype(jnp.float32)
    y = jnp.maximum((x - m_ref[...]) * s_ref[...] + b_ref[...], 0.0)
    o_ref[...] = y.astype(o_ref.dtype)


@functools.partial(jax.jit, static_argnames=("out_dtype",))
def batchnorm_relu(x, gamma, beta, *, eps=1e-5, out_dtype=jnp.bfloat16):
    # x: NHWC.  Batch statistics are a tiny reduction -> plain-JAX glue (inside the jit);
    # the normalize + affine + ReLU elementwise pass runs in Pallas, tiled over rows.
    n, h, w, c = x.shape
    R = n * h * w
    x2 = x.reshape(R, c)
    xf = x2.astype(jnp.float32)
    mean = jnp.mean(xf, axis=0, keepdims=True)
    var = jnp.mean(jnp.square(xf - mean), axis=0, keepdims=True)
    scale = gamma.reshape(1, c).astype(jnp.float32) * jax.lax.rsqrt(var + eps)
    shift = beta.reshape(1, c).astype(jnp.float32)

    tr = 512 if R >= 512 else _round_up(R, 8)
    Rp = _round_up(R, tr)
    x2p = x2 if Rp == R else jnp.pad(x2, ((0, Rp - R), (0, 0)))
    out = pl.pallas_call(
        _bn_relu_kernel,
        out_shape=jax.ShapeDtypeStruct((Rp, c), out_dtype),
        grid=(Rp // tr,),
        in_specs=[
            pl.BlockSpec((tr, c), lambda i: (i, 0)),
            pl.BlockSpec((1, c), lambda i: (0, 0)),
            pl.BlockSpec((1, c), lambda i: (0, 0)),
            pl.BlockSpec((1, c), lambda i: (0, 0)),
        ],
        out_specs=pl.BlockSpec((tr, c), lambda i: (i, 0)),
        compiler_params=pltpu.CompilerParams(dimension_semantics=("parallel",)),
    )(x2p, mean, scale, shift)
    return out[:R].reshape(n, h, w, c)


# ----------------------------------------------------------------------------
# Conv2d = im2col (glue, inside jit) + fused Pallas matmul; weights pre-laid-out at init
# ----------------------------------------------------------------------------
def _im2col(x, kh, kw, pad):
    if pad:
        x = jnp.pad(x, ((0, 0), (pad, pad), (pad, pad), (0, 0)))
    n, h, w, c = x.shape
    ho, wo = h - kh + 1, w - kw + 1
    if kh == 1 and kw == 1:
        return x.reshape(n * ho * wo, c), (n, ho, wo)            # free reshape
    if ho == 1 and wo == 1:
        return x.reshape(n, kh * kw * c), (n, 1, 1)              # window == whole map
    cols = [x[:, i:i + ho, j:j + wo, :] for i in range(kh) for j in range(kw)]
    patches = jnp.concatenate(cols, axis=-1)                     # (n, ho, wo, kh*kw*c)
    return patches.reshape(n * ho * wo, kh * kw * c), (n, ho, wo)


def conv2d(x, wmat, b, *, kh, kw, pad, activation="none", out_dtype=jnp.bfloat16):
    # x: NHWC; wmat: pre-laid-out (kh*kw*cin, cout) bf16 matrix; stride 1.
    cout = wmat.shape[1]
    patches, (n, ho, wo) = _im2col(x, kh, kw, pad)
    out = matmul_bias_act(patches, wmat, b, activation=activation, out_dtype=out_dtype)
    return out.reshape(n, ho, wo, cout)


# ----------------------------------------------------------------------------
# Bilinear upsample (align_corners=True, as F.upsample_bilinear) via 2 matmuls
# ----------------------------------------------------------------------------
def _bilinear_matrix(out_size, in_size):
    A = np.zeros((out_size, in_size), np.float32)
    if in_size == 1:
        A[:, 0] = 1.0
        return A
    if out_size == 1:
        A[0, 0] = 1.0
        return A
    scale = (in_size - 1) / (out_size - 1)
    for i in range(out_size):
        pos = i * scale
        p0 = int(np.floor(pos))
        frac = pos - p0
        p0 = min(p0, in_size - 1)
        p1 = min(p0 + 1, in_size - 1)
        A[i, p0] += 1.0 - frac
        A[i, p1] += frac
    return A


def upsample_bilinear_nhwc(x, out_h, out_w):
    n, hin, win, c = x.shape
    Ah = jnp.asarray(_bilinear_matrix(out_h, hin))
    Aw = jnp.asarray(_bilinear_matrix(out_w, win))

    # rows: sum_p Ah[i,p] * x[n,p,q,c]
    t = jnp.transpose(x, (1, 0, 2, 3)).reshape(hin, n * win * c)
    t = matmul_bias_act(Ah, t, jnp.zeros((n * win * c,), jnp.float32),
                        activation="none", out_dtype=jnp.float32)
    t = t.reshape(out_h, n, win, c).transpose(2, 1, 0, 3).reshape(win, n * out_h * c)
    # cols: sum_q Aw[j,q] * t[i,n,q,c]
    t = matmul_bias_act(Aw, t, jnp.zeros((n * out_h * c,), jnp.float32),
                        activation="none", out_dtype=jnp.float32)
    return t.reshape(out_w, n, out_h, c).transpose(1, 2, 0, 3)   # (n, out_h, out_w, c)


# ----------------------------------------------------------------------------
# FCN32 parameters (deterministic He init, pre-laid-out bf16 matmul weights)
# ----------------------------------------------------------------------------
VGG16_CFG = [64, 64, "M", 128, 128, "M", 256, 256, 256, "M",
             512, 512, 512, "M", 512, 512, 512, "M"]


def init_params(key, num_classes, cfg=VGG16_CFG, cin=3, fconn_dim=4096, feat_k=7):
    feats = []
    c_in = cin
    for v in cfg:
        if v == "M":
            feats.append(None)
        else:
            key, k1 = jax.random.split(key)
            std = float(np.sqrt(2.0 / (c_in * 9)))
            w = (jax.random.normal(k1, (9 * c_in, v), jnp.float32) * std).astype(jnp.bfloat16)
            feats.append({"w": w, "b": jnp.zeros((v,), jnp.float32)})
            c_in = v

    key, k1, k2, k3 = jax.random.split(key, 4)
    params = {"features": feats}
    std1 = float(np.sqrt(2.0 / (c_in * feat_k * feat_k)))
    params["fc1"] = {
        "w": (jax.random.normal(k1, (feat_k * feat_k * c_in, fconn_dim), jnp.float32) * std1
              ).astype(jnp.bfloat16),
        "b": jnp.zeros((fconn_dim,), jnp.float32)}
    params["bn1"] = {"g": jnp.ones((fconn_dim,), jnp.float32),
                     "b": jnp.zeros((fconn_dim,), jnp.float32)}
    std2 = float(np.sqrt(2.0 / fconn_dim))
    params["fc2"] = {
        "w": (jax.random.normal(k2, (fconn_dim, fconn_dim), jnp.float32) * std2
              ).astype(jnp.bfloat16),
        "b": jnp.zeros((fconn_dim,), jnp.float32)}
    params["bn2"] = {"g": jnp.ones((fconn_dim,), jnp.float32),
                     "b": jnp.zeros((fconn_dim,), jnp.float32)}
    params["score"] = {
        "w": (jax.random.normal(k3, (fconn_dim, num_classes), jnp.float32) * std2
              ).astype(jnp.bfloat16),
        "b": jnp.zeros((num_classes,), jnp.float32)}
    return params


# ----------------------------------------------------------------------------
# Forward pass (matches FCN32.forward), whole thing jitted
# ----------------------------------------------------------------------------
@jax.jit
def fcn32_forward(x_nchw, params):
    h = jnp.transpose(x_nchw, (0, 2, 3, 1)).astype(jnp.bfloat16)   # NCHW -> NHWC, bf16

    # self.feats : conv3x3/pad1 + ReLU blocks, maxpool 2x2/2
    for layer in params["features"]:
        if layer is None:
            h = maxpool2x2(h)
        else:
            h = conv2d(h, layer["w"], layer["b"], kh=3, kw=3, pad=1,
                       activation="relu", out_dtype=jnp.bfloat16)

    # self.fconn : Conv(->fconn_dim, 7) BN ReLU, Conv(fconn_dim->fconn_dim, 1) BN ReLU
    h = conv2d(h, params["fc1"]["w"], params["fc1"]["b"], kh=7, kw=7, pad=0,
               activation="none", out_dtype=jnp.bfloat16)
    h = batchnorm_relu(h, params["bn1"]["g"], params["bn1"]["b"], out_dtype=jnp.bfloat16)
    h = conv2d(h, params["fc2"]["w"], params["fc2"]["b"], kh=1, kw=1, pad=0,
               activation="none", out_dtype=jnp.bfloat16)
    h = batchnorm_relu(h, params["bn2"]["g"], params["bn2"]["b"], out_dtype=jnp.bfloat16)

    # self.score + sigmoid (sigmoid fused into the matmul epilogue); f32 from here on
    score = conv2d(h, params["score"]["w"], params["score"]["b"], kh=1, kw=1, pad=0,
                   activation="sigmoid", out_dtype=jnp.float32)

    # F.upsample_bilinear(out, x.size()[2:])  (align_corners=True)
    out = upsample_bilinear_nhwc(score, x_nchw.shape[2], x_nchw.shape[3])
    return jnp.transpose(out, (0, 3, 1, 2))                        # NHWC -> NCHW


if __name__ == "__main__":
    key = jax.random.PRNGKey(0)
    key, kx = jax.random.split(key)

    num_classes = 5
    # Scaled-down FCN32 config for a fast smoke test: same op sequence as the real model
    # (conv3x3+ReLU blocks, 2x2 maxpools, 7x7 fconn conv + BN + ReLU, 1x1 fconn conv + BN
    # + ReLU, 1x1 score conv, sigmoid, bilinear upsample), just with small channel widths,
    # 2 pooling stages and a 32x32 input (feature map 8x8 -> 7x7 fconn conv -> 2x2 score).
    # The full-size model is init_params(key, nc, cfg=VGG16_CFG, fconn_dim=4096) on 224x224.
    tiny_cfg = [8, 8, "M", 16, 16, "M"]
    x = jax.random.normal(kx, (2, 3, 32, 32), jnp.float32)

    params = init_params(key, num_classes, cfg=tiny_cfg, fconn_dim=32)
    out = jax.block_until_ready(fcn32_forward(x, params))

    assert out.shape == (2, num_classes, 32, 32), out.shape
    assert bool(jnp.all(jnp.isfinite(out)))
    # sigmoid range preserved by the bilinear interpolation (small fp tolerance for bf16/f32)
    assert bool(jnp.all((out >= -1e-4) & (out <= 1.0 + 1e-4)))
    print("KERNEL_OK")
</pallas_src>

<mosaic_0001>
module attributes {stable_mosaic.version = 11 : i64} {
  func.func @_matmul_bias_act_kernel(%arg0: i32, %arg1: i32, %arg2: i32, %arg3: memref<256x27xbf16, #tpu.memory_space<vmem>>, %arg4: memref<27x8xbf16, #tpu.memory_space<vmem>>, %arg5: memref<1x8xf32, #tpu.memory_space<vmem>>, %arg6: memref<256x8xbf16, #tpu.memory_space<vmem>>, %arg7: memref<256x8xf32, #tpu.memory_space<vmem>>) attributes {dimension_semantics = [#tpu.dimension_semantics<parallel>, #tpu.dimension_semantics<parallel>, #tpu.dimension_semantics<arbitrary>], iteration_bounds = array<i64: 8, 1, 1>, scalar_prefetch = 0 : i64, scratch_operands = 1 : i64, tpu.core_type = #tpu.core_type<tc>, window_params = [{transform_indices = @transform_0, window_bounds = array<i64: 256, 27>}, {transform_indices = @transform_1, window_bounds = array<i64: 27, 8>}, {transform_indices = @transform_2, window_bounds = array<i64: 1, 8>}, {transform_indices = @transform_3, window_bounds = array<i64: 256, 8>}]} {
    %c0_i32 = arith.constant 0 : i32
    %0 = arith.cmpi eq, %arg2, %c0_i32 : i32
    %1 = arith.extui %0 : i1 to i32
    %c0_i32_0 = arith.constant 0 : i32
    %2 = arith.cmpi ne, %1, %c0_i32_0 : i32
    scf.if %2 {
      %cst_10 = arith.constant 0.000000e+00 : f32
      %12 = vector.broadcast %cst_10 : f32 to vector<256x8xf32>
      %c0_11 = arith.constant 0 : index
      %c0_12 = arith.constant 0 : index
      %13 = vector.load %arg7[%c0_11, %c0_12] : memref<256x8xf32, #tpu.memory_space<vmem>>, vector<256x8xf32>
      tpu.vector_store %arg7[%c0_11, %c0_12], %12 {strides = array<i32>} : memref<256x8xf32, #tpu.memory_space<vmem>>, vector<256x8xf32>,
    } else {
    }
    %c0 = arith.constant 0 : index
    %c0_1 = arith.constant 0 : index
    %3 = vector.load %arg7[%c0, %c0_1] : memref<256x8xf32, #tpu.memory_space<vmem>>, vector<256x8xf32>
    %c0_2 = arith.constant 0 : index
    %c0_3 = arith.constant 0 : index
    %4 = vector.load %arg3[%c0_2, %c0_3] : memref<256x27xbf16, #tpu.memory_space<vmem>>, vector<256x27xbf16>
    %c0_4 = arith.constant 0 : index
    %c0_5 = arith.constant 0 : index
    %5 = vector.load %arg4[%c0_4, %c0_5] : memref<27x8xbf16, #tpu.memory_space<vmem>>, vector<27x8xbf16>
    %cst = arith.constant dense<0.000000e+00> : vector<256x8xf32>
    %6 = tpu.matmul %4, %5, %cst {dimension_numbers = #tpu.dot_dimension_numbers<[1], [0], [0], [1], [0, 0, 1, 1], [], []>} : vector<256x27xbf16>, vector<27x8xbf16>, vector<256x8xf32> -> vector<256x8xf32>
    %7 = arith.addf %3, %6 : vector<256x8xf32>
    %c0_6 = arith.constant 0 : index
    %c0_7 = arith.constant 0 : index
    %8 = vector.load %arg7[%c0_6, %c0_7] : memref<256x8xf32, #tpu.memory_space<vmem>>, vector<256x8xf32>
    tpu.vector_store %arg7[%c0_6, %c0_7], %7 {strides = array<i32>} : memref<256x8xf32, #tpu.memory_space<vmem>>, vector<256x8xf32>,
    %c0_i32_8 = arith.constant 0 : i32
    %9 = arith.cmpi eq, %arg2, %c0_i32_8 : i32
    %10 = arith.extui %9 : i1 to i32
    %c0_i32_9 = arith.constant 0 : i32
    %11 = arith.cmpi ne, %10, %c0_i32_9 : i32
    scf.if %11 {
      %c0_10 = arith.constant 0 : index
      %c0_11 = arith.constant 0 : index
      %12 = vector.load %arg7[%c0_10, %c0_11] : memref<256x8xf32, #tpu.memory_space<vmem>>, vector<256x8xf32>
      %c0_12 = arith.constant 0 : index
      %c0_13 = arith.constant 0 : index
      %13 = vector.load %arg5[%c0_12, %c0_13] : memref<1x8xf32, #tpu.memory_space<vmem>>, vector<1x8xf32>
      %14 = vector.broadcast %13 : vector<1x8xf32> to vector<256x8xf32>
      %15 = arith.addf %12, %14 : vector<256x8xf32>
      %cst_14 = arith.constant 0.000000e+00 : f32
      %16 = vector.broadcast %cst_14 : f32 to vector<256x8xf32>
      %17 = arith.maximumf %15, %16 : vector<256x8xf32>
      %18 = arith.truncf %17 : vector<256x8xf32> to vector<256x8xbf16>
      %c0_15 = arith.constant 0 : index
      %c0_16 = arith.constant 0 : index
      %19 = vector.load %arg6[%c0_15, %c0_16] : memref<256x8xbf16, #tpu.memory_space<vmem>>, vector<256x8xbf16>
      tpu.vector_store %arg6[%c0_15, %c0_16], %18 {strides = array<i32>} : memref<256x8xbf16, #tpu.memory_space<vmem>>, vector<256x8xbf16>,
    } else {
    }
    return
  }
  func.func @transform_0(%arg0: i32, %arg1: i32, %arg2: i32) -> (i32, i32) {
    %c0_i32 = arith.constant 0 : i32
    return %arg0, %arg2 : i32, i32
  }
  func.func @transform_1(%arg0: i32, %arg1: i32, %arg2: i32) -> (i32, i32) {
    %c0_i32 = arith.constant 0 : i32
    return %arg2, %arg1 : i32, i32
  }
  func.func @transform_2(%arg0: i32, %arg1: i32, %arg2: i32) -> (i32, i32) {
    %c0_i32 = arith.constant 0 : i32
    %c0_i32_0 = arith.constant 0 : i32
    return %c0_i32, %arg1 : i32, i32
  }
  func.func @transform_3(%arg0: i32, %arg1: i32, %arg2: i32) -> (i32, i32) {
    %c0_i32 = arith.constant 0 : i32
    return %arg0, %arg1 : i32, i32
  }
}

</mosaic_0001>

<bundles_post_ra>
// kernel: matmul_bias_act.1
= control target key start
LH: loop header
LB: loop body
LE: loop exit
PB: predicated region body
PF: predicated region fallthrough
CT: control target
= control target key end

     0   :  { %s1143_s12 = smov 0   ;;  %s1145_s13 = smov 0   ;;  %s1393_s0 = inlined_call_operand.vmem [shape: bf16[2048,27], index: 0, kind: input, shape index: {}]   ;;  %s1394_s1 = inlined_call_operand.vmem [shape: bf16[27,8], index: 1, kind: input, shape index: {}]   ;;  %s1395_s2 = inlined_call_operand.vmem [shape: f32[1,8], index: 2, kind: input, shape index: {}]   ;;  %s1396_s3 = inlined_call_operand.vmem [shape: bf16[2048,8], index: 3, kind: output, shape index: {}]  }
   0x1   :  { %s1147_s14 = smov 0  }
   0x2 LB: > { %s32_s15 = sadd.s32 1, %s1115_s13  ;;  %p951_p0 = scmp.ge.s32.totalorder %s1119_s14, 1  ;;  %s1119_s14 = sphi %s1147_s14, %s13_s14   ;;  %s1115_s13 = sphi %s1145_s13, %s1398_s13   ;;  %s1111_s12 = sphi %s1143_s12, %s1397_s12  }
   0x3   : > { %p34_p1 = scmp.ge.s32.totalorder %s32_s15, 8  ;;  %p188_p2 = scmp.lt.s32.totalorder %s1119_s14, 9 }
   0x5   : > { %s1400_s15 = smov (%p34_p1, %s32_s15), 0  ;;  %p189_p3 = pnand %p951_p0, %p188_p2 }
   0x6   : > { %s952_s20 = sshll.u32 (!%p189_p3), %s1111_s12, 5 }
   0x7   : > { %192 = sbr.rel (%p189_p3) target bundleno = 233 (0xe9), region = 32  ;;  %p230_p4 = scmp.lt.s32.totalorder (!%p189_p3), %s952_s20, 255 }
   0xc   : > { %v1026_v0 = vld [vmem:[%s1394_s1 + $0x8] sm:$0xf]  ;;  %v1063_v1 = vld [vmem:[%s1394_s1 + $0x8] sm:$0x30]  ;;  %vm505_vm0 = vcmask 1044480   ;;  %vm506_vm1 = vcmask 1045504  }
   0xd   : > { %v1027_v2 = vor.u32 %v1063_v1, %v1026_v0  ;;  %v1121_v3 = vmov 65535   ;;  %s1402_s20 = smov (!%p230_p4, %s952_s20), 255  ;;  %v1062_v7 = vld [vmem:[%s1394_s1] sm:$0xff]  ;;  %vm456_vm2 = vcmask 220160   ;;  %vm264_vm3 = vcmask 64512  }
   0xe   : > { %v507_v4 = vsel %vm505_vm0, 4294967295, %v1121_v3  ;;  %s953_s23 = sshll.u32 %s1402_s20, 2  ;;  %v1122_v16 = vmov 0.0   ;;  %v1249_v35 = vld [vmem:[%s1395_s2] ss:$0 sm:$0xff]  ;;  %vm801_vm4 = vcmask 60416  }
   0xf   : > { %v508_v5 = vsel %vm506_vm1, %v507_v4, 0  ;;  %s1178_s26 = scalar_lea.vmem %s1393_s0, %s953_s23  ;;  %265 = vst.msk [vmem:[#allocation2] sm:$0xff] %vm264_vm3, %v1122_v16  ;;  %s1262_s4 = scalar_lea.vmem %s1396_s3, %s953_s23 }
  0x10   : > { %v510_v6 = vand.u32 %v1027_v2, %v508_v5  ;;  %v1046_v8 = vld [vmem:[%s1178_s26] sm:$0xff]  ;;  %v1047_v12 = vld [vmem:[%s1178_s26 + $0x8] sm:$0xff]  ;;  %266 = vst.msk [vmem:[#allocation2 + $0x8] sm:$0xff] %vm264_vm3, %v1122_v16  ;;  %v1048_v17 = vld [vmem:[%s1178_s26 + $0x10] sm:$0xff] }
  0x11   : > { %v1050_v9 = vld [vmem:[%s1178_s26 + $0x20] sm:$0xff]  ;;  %v1051_v13 = vld [vmem:[%s1178_s26 + $0x28] sm:$0xff]  ;;  %267 = vst.msk [vmem:[#allocation2 + $0x10] sm:$0xff] %vm264_vm3, %v1122_v16  ;;  %v1052_v18 = vld [vmem:[%s1178_s26 + $0x30] sm:$0xff] }
  0x12   : > { %518 = vmatpush.bf16.msra.mxu0 %v510_v6  ;;  %1064 = vmatpush.bf16.msra.mxu1 %v510_v6  ;;  %v1054_v10 = vld [vmem:[%s1178_s26 + $0x40] sm:$0xff]  ;;  %v1055_v14 = vld [vmem:[%s1178_s26 + $0x48] sm:$0xff]  ;;  %268 = vst.msk [vmem:[#allocation2 + $0x18] sm:$0xff] %vm264_vm3, %v1122_v16  ;;  %v1056_v19 = vld [vmem:[%s1178_s26 + $0x50] sm:$0xff] }
  0x13   : > { %1065 = vmatpush.bf16.msra.mxu2 %v510_v6  ;;  %1066 = vmatpush.bf16.msra.mxu3 %v510_v6  ;;  %v1058_v11 = vld [vmem:[%s1178_s26 + $0x60] sm:$0xff]  ;;  %v1059_v15 = vld [vmem:[%s1178_s26 + $0x68] sm:$0xff]  ;;  %269 = vst.msk [vmem:[#allocation2 + $0x20] sm:$0xff] %vm264_vm3, %v1122_v16  ;;  %v1060_v20 = vld [vmem:[%s1178_s26 + $0x70] sm:$0xff] }
  0x14   : > { %270 = vst.msk [vmem:[#allocation2 + $0x28] sm:$0xff] %vm264_vm3, %v1122_v16  ;;  %v1049_v21 = vld [vmem:[%s1178_s26 + $0x18] sm:$0xff] }
  0x15   : > { %271 = vst.msk [vmem:[#allocation2 + $0x30] sm:$0xff] %vm264_vm3, %v1122_v16  ;;  %v1053_v22 = vld [vmem:[%s1178_s26 + $0x38] sm:$0xff] }
  0x16   : > { %519 = vmatpush.bf16.msra.mxu0 %v1062_v7  ;;  %1067 = vmatpush.bf16.msra.mxu1 %v1062_v7  ;;  %272 = vst.msk [vmem:[#allocation2 + $0x38] sm:$0xff] %vm264_vm3, %v1122_v16  ;;  %v1057_v23 = vld [vmem:[%s1178_s26 + $0x58] sm:$0xff]  ;;  %v297_v25 = vld [vmem:[#allocation2] sm:$0xff] }
  0x17   : > { %1068 = vmatpush.bf16.msra.mxu2 %v1062_v7  ;;  %1069 = vmatpush.bf16.msra.mxu3 %v1062_v7  ;;  %273 = vst.msk [vmem:[#allocation2 + $0x40] sm:$0xff] %vm264_vm3, %v1122_v16  ;;  %v1061_v24 = vld [vmem:[%s1178_s26 + $0x78] sm:$0xff]  ;;  %v298_v33 = vld [vmem:[#allocation2 + $0x8] sm:$0xff] }
  0x18   : > { %274 = vst.msk [vmem:[#allocation2 + $0x48] sm:$0xff] %vm264_vm3, %v1122_v16  ;;  %v299_v52 = vld [vmem:[#allocation2 + $0x10] sm:$0xff] }
  0x19   : > { %1028 = vmatmul.msk.bf16.vlgmr.msra.gmra.mxu0 %vm456_vm2, %v1046_v8  ;;  %1032 = vmatmul.msk.bf16.vlgmr.msra.gmra.mxu1 %vm456_vm2, %v1050_v9  ;;  %275 = vst.msk [vmem:[#allocation2 + $0x50] sm:$0xff] %vm264_vm3, %v1122_v16 }
  0x1a   : > { %1036 = vmatmul.msk.bf16.vlgmr.msra.gmra.mxu2 %vm456_vm2, %v1054_v10  ;;  %1040 = vmatmul.msk.bf16.vlgmr.msra.gmra.mxu3 %vm456_vm2, %v1058_v11  ;;  %276 = vst.msk [vmem:[#allocation2 + $0x58] sm:$0xff] %vm264_vm3, %v1122_v16 }
  0x1b   : > { %277 = vst.msk [vmem:[#allocation2 + $0x60] sm:$0xff] %vm264_vm3, %v1122_v16 }
  0x1c   : > { %278 = vst.msk [vmem:[#allocation2 + $0x68] sm:$0xff] %vm264_vm3, %v1122_v16 }
  0x1d   : > { %279 = vst.msk [vmem:[#allocation2 + $0x70] sm:$0xff] %vm264_vm3, %v1122_v16 }
  0x1e   : > { %280 = vst.msk [vmem:[#allocation2 + $0x78] sm:$0xff] %vm264_vm3, %v1122_v16  ;;  %v305_v26 = vld [vmem:[#allocation2 + $0x40] sm:$0xff] }
  0x1f   : > { %281 = vst.msk [vmem:[#allocation2 + $0x80] sm:$0xff] %vm264_vm3, %v1122_v16  ;;  %v306_v34 = vld [vmem:[#allocation2 + $0x48] sm:$0xff] }
  0x20   : > { %282 = vst.msk [vmem:[#allocation2 + $0x88] sm:$0xff] %vm264_vm3, %v1122_v16  ;;  %v307_v56 = vld [vmem:[#allocation2 + $0x50] sm:$0xff] }
  0x21   : > { %283 = vst.msk [vmem:[#allocation2 + $0x90] sm:$0xff] %vm264_vm3, %v1122_v16 }
  0x22   : > { %284 = vst.msk [vmem:[#allocation2 + $0x98] sm:$0xff] %vm264_vm3, %v1122_v16 }
  0x23   : > { %285 = vst.msk [vmem:[#allocation2 + $0xa0] sm:$0xff] %vm264_vm3, %v1122_v16 }
  0x24   : > { %286 = vst.msk [vmem:[#allocation2 + $0xa8] sm:$0xff] %vm264_vm3, %v1122_v16 }
  0x25   : > { %287 = vst.msk [vmem:[#allocation2 + $0xb0] sm:$0xff] %vm264_vm3, %v1122_v16 }
  0x26   : > { %288 = vst.msk [vmem:[#allocation2 + $0xb8] sm:$0xff] %vm264_vm3, %v1122_v16  ;;  %v313_v31 = vld [vmem:[#allocation2 + $0x80] sm:$0xff] }
  0x27   : > { %289 = vst.msk [vmem:[#allocation2 + $0xc0] sm:$0xff] %vm264_vm3, %v1122_v16  ;;  %v314_v49 = vld [vmem:[#allocation2 + $0x88] sm:$0xff] }
  0x28   : > { %290 = vst.msk [vmem:[#allocation2 + $0xc8] sm:$0xff] %vm264_vm3, %v1122_v16  ;;  %v315_v10 = vld [vmem:[#allocation2 + $0x90] sm:$0xff] }
  0x29   : > { %1029 = vmatmul.msk.bf16.gmra.mxu0 %vm456_vm2, %v1047_v12  ;;  %1033 = vmatmul.msk.bf16.gmra.mxu1 %vm456_vm2, %v1051_v13  ;;  %291 = vst.msk [vmem:[#allocation2 + $0xd0] sm:$0xff] %vm264_vm3, %v1122_v16 }
  0x2a   : > { %1037 = vmatmul.msk.bf16.gmra.mxu2 %vm456_vm2, %v1055_v14  ;;  %1041 = vmatmul.msk.bf16.gmra.mxu3 %vm456_vm2, %v1059_v15  ;;  %292 = vst.msk [vmem:[#allocation2 + $0xd8] sm:$0xff] %vm264_vm3, %v1122_v16 }
  0x2b   : > { %293 = vst.msk [vmem:[#allocation2 + $0xe0] sm:$0xff] %vm264_vm3, %v1122_v16 }
  0x2c   : > { %294 = vst.msk [vmem:[#allocation2 + $0xe8] sm:$0xff] %vm264_vm3, %v1122_v16 }
  0x2d   : > { %295 = vst.msk [vmem:[#allocation2 + $0xf0] sm:$0xff] %vm264_vm3, %v1122_v16 }
  0x2e   : > { %296 = vst.msk [vmem:[#allocation2 + $0xf8] sm:$0xff] %vm264_vm3, %v1122_v16  ;;  %v321_v32 = vld [vmem:[#allocation2 + $0xc0] sm:$0xff] }
  0x2f   : > { %v322_v50 = vld [vmem:[#allocation2 + $0xc8] sm:$0xff] }
  0x30   : > { %v323_v13 = vld [vmem:[#allocation2 + $0xd0] sm:$0xff] }
  0x39   : > { %1030 = vmatmul.msk.bf16.gmra.mxu0 %vm456_vm2, %v1048_v17  ;;  %1034 = vmatmul.msk.bf16.gmra.mxu1 %vm456_vm2, %v1052_v18  ;;  %v300_v18 = vld [vmem:[#allocation2 + $0x18] sm:$0xff] }
  0x3a   : > { %1038 = vmatmul.msk.bf16.gmra.mxu2 %vm456_vm2, %v1056_v19  ;;  %1042 = vmatmul.msk.bf16.gmra.mxu3 %vm456_vm2, %v1060_v20 }
  0x49   : > { %1031 = vmatmul.msk.bf16.gmra.mxu0 %vm456_vm2, %v1049_v21  ;;  %1035 = vmatmul.msk.bf16.gmra.mxu1 %vm456_vm2, %v1053_v22  ;;  %v308_v22 = vld [vmem:[#allocation2 + $0x58] sm:$0xff] }
  0x4a   : > { %1039 = vmatmul.msk.bf16.gmra.mxu2 %vm456_vm2, %v1057_v23  ;;  %1043 = vmatmul.msk.bf16.gmra.mxu3 %vm456_vm2, %v1061_v24 }
  0x96   : > { %v521_v27 = vpop.f32.mrf.mxu0  ;;  %v541_v28 = vpop.f32.mrf.mxu1 }
  0x97   : > { %v601_v29 = vadd.f32 %v521_v27, %v297_v25  ;;  %v609_v30 = vadd.f32 %v541_v28, %v305_v26 }
  0x99   : > { %634 = vst.msk [vmem:[#allocation2] sm:$0xff] %vm264_vm3, %v601_v29 }
  0x9a   : > { %642 = vst.msk [vmem:[#allocation2 + $0x40] sm:$0xff] %vm264_vm3, %v609_v30 }
  0x9d   : > { %v561_v36 = vpop.f32.mrf.mxu2  ;;  %v581_v37 = vpop.f32.mrf.mxu3 }
  0x9e   : > { %v617_v38 = vadd.f32 %v561_v36, %v313_v31  ;;  %v625_v39 = vadd.f32 %v581_v37, %v321_v32  ;;  %v523_v40 = vpop.f32.mrf.mxu0  ;;  %v543_v41 = vpop.f32.mrf.mxu1 }
  0x9f   : > { %v602_v42 = vadd.f32 %v523_v40, %v298_v33  ;;  %v610_v43 = vadd.f32 %v543_v41, %v306_v34 }
  0xa0   : > { %v669_v44 = vld [vmem:[#allocation2] sm:$0xff]  ;;  %650 = vst.msk [vmem:[#allocation2 + $0x80] sm:$0xff] %vm264_vm3, %v617_v38 }
  0xa1   : > { %v705_v45 = vadd.f32 %v1249_v35, %v669_v44  ;;  %v677_v46 = vld [vmem:[#allocation2 + $0x40] sm:$0xff]  ;;  %658 = vst.msk [vmem:[#allocation2 + $0xc0] sm:$0xff] %vm264_vm3, %v625_v39  ;;  %v316_v39 = vld [vmem:[#allocation2 + $0x98] sm:$0xff] }
  0xa2   : > { %v713_v47 = vadd.f32 %v1249_v35, %v677_v46  ;;  %635 = vst.msk [vmem:[#allocation2 + $0x8] sm:$0xff] %vm264_vm3, %v602_v42 }
  0xa3   : > { %v737_v48 = vmax.f32 %v705_v45, 0.0  ;;  %643 = vst.msk [vmem:[#allocation2 + $0x48] sm:$0xff] %vm264_vm3, %v610_v43  ;;  %v324_v43 = vld [vmem:[#allocation2 + $0xd8] sm:$0xff] }
  0xa4   : > { %v745_v51 = vmax.f32 %v713_v47, 0.0  ;;  %v301_v47 = vld [vmem:[#allocation2 + $0x20] sm:$0xff] }
  0xa5   : > { %v769_v53 = vpack.c.bf16 %v737_v48, %v737_v48  ;;  %v563_v54 = vpop.f32.mrf.mxu2  ;;  %v583_v55 = vpop.f32.mrf.mxu3 }
  0xa6   : > { %v777_v57 = vpack.c.bf16 %v745_v51, %v745_v51  ;;  %v618_v58 = vadd.f32 %v563_v54, %v314_v49  ;;  %v626_v59 = vadd.f32 %v583_v55, %v322_v50  ;;  %v526_v60 = vpop.f32.mrf.mxu0  ;;  %v546_v61 = vpop.f32.mrf.mxu1 }
  0xa7   : > { %802 = vst.msk [vmem:[%s1262_s4] sm:$0xf] %vm801_vm4, %v769_v53  ;;  %v685_v62 = vld [vmem:[#allocation2 + $0x80] sm:$0xff]  ;;  %v603_v63 = vadd.f32 %v526_v60, %v299_v52  ;;  %v611_v2 = vadd.f32 %v546_v61, %v307_v56 }
  0xa8   : > { %810 = vst.msk [vmem:[%s1262_s4 + $0x20] sm:$0xf] %vm801_vm4, %v777_v57  ;;  %v721_v0 = vadd.f32 %v1249_v35, %v685_v62  ;;  %v693_v1 = vld [vmem:[#allocation2 + $0xc0] sm:$0xff] }
  0xa9   : > { %v729_v3 = vadd.f32 %v1249_v35, %v693_v1  ;;  %v670_v4 = vld [vmem:[#allocation2 + $0x8] sm:$0xff]  ;;  %651 = vst.msk [vmem:[#allocation2 + $0x88] sm:$0xff] %vm264_vm3, %v618_v58  ;;  %v309_v52 = vld [vmem:[#allocation2 + $0x60] sm:$0xff] }
  0xaa   : > { %v753_v5 = vmax.f32 %v721_v0, 0.0  ;;  %v706_v6 = vadd.f32 %v1249_v35, %v670_v4  ;;  %v678_v7 = vld [vmem:[#allocation2 + $0x48] sm:$0xff]  ;;  %659 = vst.msk [vmem:[#allocation2 + $0xc8] sm:$0xff] %vm264_vm3, %v626_v59 }
  0xab   : > { %v761_v8 = vmax.f32 %v729_v3, 0.0  ;;  %v714_v9 = vadd.f32 %v1249_v35, %v678_v7  ;;  %636 = vst.msk [vmem:[#allocation2 + $0x10] sm:$0xff] %vm264_vm3, %v603_v63  ;;  %v317_v3 = vld [vmem:[#allocation2 + $0xa0] sm:$0xff] }
  0xac   : > { %v785_v11 = vpack.c.bf16 %v753_v5, %v753_v5  ;;  %v738_v12 = vmax.f32 %v706_v6, 0.0  ;;  %644 = vst.msk [vmem:[#allocation2 + $0x50] sm:$0xff] %vm264_vm3, %v611_v2 }
  0xad   : > { %v793_v14 = vpack.c.bf16 %v761_v8, %v761_v8  ;;  %v746_v15 = vmax.f32 %v714_v9, 0.0  ;;  %v566_v16 = vpop.f32.mrf.mxu2  ;;  %v586_v17 = vpop.f32.mrf.mxu3  ;;  %v325_v8 = vld [vmem:[#allocation2 + $0xe0] sm:$0xff] }
  0xae   : > { %818 = vst.msk [vmem:[%s1262_s4 + $0x40] sm:$0xf] %vm801_vm4, %v785_v11  ;;  %v770_v19 = vpack.c.bf16 %v738_v12, %v738_v12  ;;  %v619_v20 = vadd.f32 %v566_v16, %v315_v10  ;;  %v528_v21 = vpop.f32.mrf.mxu0  ;;  %v548_v23 = vpop.f32.mrf.mxu1  ;;  %v627_v25 = vadd.f32 %v586_v17, %v323_v13  ;;  %v302_v13 = vld [vmem:[#allocation2 + $0x28] sm:$0xff] }
  0xaf   : > { %826 = vst.msk [vmem:[%s1262_s4 + $0x60] sm:$0xf] %vm801_vm4, %v793_v14  ;;  %v778_v24 = vpack.c.bf16 %v746_v15, %v746_v15  ;;  %v604_v27 = vadd.f32 %v528_v21, %v300_v18  ;;  %v612_v30 = vadd.f32 %v548_v23, %v308_v22  ;;  %v310_v16 = vld [vmem:[#allocation2 + $0x68] sm:$0xff] }
  0xb0   : > { %803 = vst.msk [vmem:[%s1262_s4 + $0x4] sm:$0xf] %vm801_vm4, %v770_v19  ;;  %v686_v26 = vld [vmem:[#allocation2 + $0x88] sm:$0xff] }
  0xb1   : > { %811 = vst.msk [vmem:[%s1262_s4 + $0x24] sm:$0xf] %vm801_vm4, %v778_v24  ;;  %v722_v28 = vadd.f32 %v1249_v35, %v686_v26  ;;  %v694_v29 = vld [vmem:[#allocation2 + $0xc8] sm:$0xff] }
  0xb2   : > { %v730_v31 = vadd.f32 %v1249_v35, %v694_v29  ;;  %v671_v32 = vld [vmem:[#allocation2 + $0x10] sm:$0xff]  ;;  %652 = vst.msk [vmem:[#allocation2 + $0x90] sm:$0xff] %vm264_vm3, %v619_v20  ;;  %v318_v24 = vld [vmem:[#allocation2 + $0xa8] sm:$0xff] }
  0xb3   : > { %v754_v33 = vmax.f32 %v722_v28, 0.0  ;;  %v707_v34 = vadd.f32 %v1249_v35, %v671_v32  ;;  %v679_v36 = vld [vmem:[#allocation2 + $0x50] sm:$0xff]  ;;  %660 = vst.msk [vmem:[#allocation2 + $0xd0] sm:$0xff] %vm264_vm3, %v627_v25 }
  0xb4   : > { %v762_v37 = vmax.f32 %v730_v31, 0.0  ;;  %v715_v38 = vadd.f32 %v1249_v35, %v679_v36  ;;  %637 = vst.msk [vmem:[#allocation2 + $0x18] sm:$0xff] %vm264_vm3, %v604_v27  ;;  %v326_v36 = vld [vmem:[#allocation2 + $0xe8] sm:$0xff] }
  0xb5   : > { %v786_v40 = vpack.c.bf16 %v754_v33, %v754_v33  ;;  %v739_v41 = vmax.f32 %v707_v34, 0.0  ;;  %645 = vst.msk [vmem:[#allocation2 + $0x58] sm:$0xff] %vm264_vm3, %v612_v30  ;;  %v568_v42 = vpop.f32.mrf.mxu2  ;;  %v588_v44 = vpop.f32.mrf.mxu3 }
  0xb6   : > { %v794_v45 = vpack.c.bf16 %v762_v37, %v762_v37  ;;  %v747_v46 = vmax.f32 %v715_v38, 0.0  ;;  %v531_v48 = vpop.f32.mrf.mxu0  ;;  %v551_v49 = vpop.f32.mrf.mxu1  ;;  %v620_v51 = vadd.f32 %v568_v42, %v316_v39  ;;  %v628_v54 = vadd.f32 %v588_v44, %v324_v43  ;;  %v311_v44 = vld [vmem:[#allocation2 + $0x70] sm:$0xff] }
  0xb7   : > { %819 = vst.msk [vmem:[%s1262_s4 + $0x44] sm:$0xf] %vm801_vm4, %v786_v40  ;;  %v771_v50 = vpack.c.bf16 %v739_v41, %v739_v41  ;;  %v605_v56 = vadd.f32 %v531_v48, %v301_v47  ;;  %v613_v59 = vadd.f32 %v551_v49, %v309_v52  ;;  %v303_v40 = vld [vmem:[#allocation2 + $0x30] sm:$0xff] }
  0xb8   : > { %827 = vst.msk [vmem:[%s1262_s4 + $0x64] sm:$0xf] %vm801_vm4, %v794_v45  ;;  %v779_v53 = vpack.c.bf16 %v747_v46, %v747_v46  ;;  %v327_v52 = vld [vmem:[#allocation2 + $0xf0] sm:$0xff] }
  0xb9   : > { %804 = vst.msk [vmem:[%s1262_s4 + $0x8] sm:$0xf] %vm801_vm4, %v771_v50  ;;  %v687_v55 = vld [vmem:[#allocation2 + $0x90] sm:$0xff] }
  0xba   : > { %812 = vst.msk [vmem:[%s1262_s4 + $0x28] sm:$0xf] %vm801_vm4, %v779_v53  ;;  %v723_v57 = vadd.f32 %v1249_v35, %v687_v55  ;;  %v695_v58 = vld [vmem:[#allocation2 + $0xd0] sm:$0xff] }
  0xbb   : > { %v731_v60 = vadd.f32 %v1249_v35, %v695_v58  ;;  %v672_v61 = vld [vmem:[#allocation2 + $0x18] sm:$0xff]  ;;  %653 = vst.msk [vmem:[#allocation2 + $0x98] sm:$0xff] %vm264_vm3, %v620_v51  ;;  %v319_v51 = vld [vmem:[#allocation2 + $0xb0] sm:$0xff] }
  0xbc   : > { %v755_v62 = vmax.f32 %v723_v57, 0.0  ;;  %v708_v63 = vadd.f32 %v1249_v35, %v672_v61  ;;  %v680_v0 = vld [vmem:[#allocation2 + $0x58] sm:$0xff]  ;;  %661 = vst.msk [vmem:[#allocation2 + $0xd8] sm:$0xff] %vm264_vm3, %v628_v54 }
  0xbd   : > { %v763_v1 = vmax.f32 %v731_v60, 0.0  ;;  %v716_v2 = vadd.f32 %v1249_v35, %v680_v0  ;;  %638 = vst.msk [vmem:[#allocation2 + $0x20] sm:$0xff] %vm264_vm3, %v605_v56  ;;  %v571_v4 = vpop.f32.mrf.mxu2  ;;  %v591_v5 = vpop.f32.mrf.mxu3 }
  0xbe   : > { %v787_v6 = vpack.c.bf16 %v755_v62, %v755_v62  ;;  %v740_v7 = vmax.f32 %v708_v63, 0.0  ;;  %646 = vst.msk [vmem:[#allocation2 + $0x60] sm:$0xff] %vm264_vm3, %v613_v59  ;;  %v533_v9 = vpop.f32.mrf.mxu0  ;;  %v553_v10 = vpop.f32.mrf.mxu1  ;;  %v621_v15 = vadd.f32 %v571_v4, %v317_v3  ;;  %v629_v18 = vadd.f32 %v591_v5, %v325_v8 }
  0xbf   : > { %v795_v11 = vpack.c.bf16 %v763_v1, %v763_v1  ;;  %v748_v12 = vmax.f32 %v716_v2, 0.0  ;;  %v606_v20 = vadd.f32 %v533_v9, %v302_v13  ;;  %v614_v23 = vadd.f32 %v553_v10, %v310_v16  ;;  %v312_v10 = vld [vmem:[#allocation2 + $0x78] sm:$0xff] }
  0xc0   : > { %820 = vst.msk [vmem:[%s1262_s4 + $0x48] sm:$0xf] %vm801_vm4, %v787_v6  ;;  %v772_v14 = vpack.c.bf16 %v740_v7, %v740_v7  ;;  %v304_v6 = vld [vmem:[#allocation2 + $0x38] sm:$0xff] }
  0xc1   : > { %828 = vst.msk [vmem:[%s1262_s4 + $0x68] sm:$0xf] %vm801_vm4, %v795_v11  ;;  %v780_v17 = vpack.c.bf16 %v748_v12, %v748_v12  ;;  %v320_v16 = vld [vmem:[#allocation2 + $0xb8] sm:$0xff] }
  0xc2   : > { %805 = vst.msk [vmem:[%s1262_s4 + $0xc] sm:$0xf] %vm801_vm4, %v772_v14  ;;  %v688_v19 = vld [vmem:[#allocation2 + $0x98] sm:$0xff] }
  0xc3   : > { %813 = vst.msk [vmem:[%s1262_s4 + $0x2c] sm:$0xf] %vm801_vm4, %v780_v17  ;;  %v724_v21 = vadd.f32 %v1249_v35, %v688_v19  ;;  %v696_v22 = vld [vmem:[#allocation2 + $0xd8] sm:$0xff] }
  0xc4   : > { %v732_v25 = vadd.f32 %v1249_v35, %v696_v22  ;;  %v673_v26 = vld [vmem:[#allocation2 + $0x20] sm:$0xff]  ;;  %654 = vst.msk [vmem:[#allocation2 + $0xa0] sm:$0xff] %vm264_vm3, %v621_v15  ;;  %v328_v17 = vld [vmem:[#allocation2 + $0xf8] sm:$0xff] }
  0xc5   : > { %v756_v27 = vmax.f32 %v724_v21, 0.0  ;;  %v709_v28 = vadd.f32 %v1249_v35, %v673_v26  ;;  %v681_v29 = vld [vmem:[#allocation2 + $0x60] sm:$0xff]  ;;  %662 = vst.msk [vmem:[#allocation2 + $0xe0] sm:$0xff] %vm264_vm3, %v629_v18  ;;  %v573_v30 = vpop.f32.mrf.mxu2  ;;  %v593_v31 = vpop.f32.mrf.mxu3 }
  0xc6   : > { %v764_v32 = vmax.f32 %v732_v25, 0.0  ;;  %v717_v33 = vadd.f32 %v1249_v35, %v681_v29  ;;  %639 = vst.msk [vmem:[#allocation2 + $0x28] sm:$0xff] %vm264_vm3, %v606_v20  ;;  %v622_v34 = vadd.f32 %v573_v30, %v318_v24  ;;  %v536_v37 = vpop.f32.mrf.mxu0  ;;  %v556_v41 = vpop.f32.mrf.mxu1  ;;  %v630_v46 = vadd.f32 %v593_v31, %v326_v36 }
  0xc7   : > { %v788_v38 = vpack.c.bf16 %v756_v27, %v756_v27  ;;  %v741_v39 = vmax.f32 %v709_v28, 0.0  ;;  %647 = vst.msk [vmem:[#allocation2 + $0x68] sm:$0xff] %vm264_vm3, %v614_v23  ;;  %v607_v48 = vadd.f32 %v536_v37, %v303_v40  ;;  %v615_v50 = vadd.f32 %v556_v41, %v311_v44 }
  0xc8   : > { %v796_v42 = vpack.c.bf16 %v764_v32, %v764_v32  ;;  %v749_v43 = vmax.f32 %v717_v33, 0.0  ;;  %655 = vst.msk [vmem:[#allocation2 + $0xa8] sm:$0xff] %vm264_vm3, %v622_v34 }
  0xc9   : > { %821 = vst.msk [vmem:[%s1262_s4 + $0x4c] sm:$0xf] %vm801_vm4, %v788_v38  ;;  %v773_v45 = vpack.c.bf16 %v741_v39, %v741_v39 }
  0xca   : > { %829 = vst.msk [vmem:[%s1262_s4 + $0x6c] sm:$0xf] %vm801_vm4, %v796_v42  ;;  %v781_v47 = vpack.c.bf16 %v749_v43, %v749_v43 }
  0xcb   : > { %806 = vst.msk [vmem:[%s1262_s4 + $0x10] sm:$0xf] %vm801_vm4, %v773_v45  ;;  %v689_v49 = vld [vmem:[#allocation2 + $0xa0] sm:$0xff] }
  0xcc   : > { %814 = vst.msk [vmem:[%s1262_s4 + $0x30] sm:$0xf] %vm801_vm4, %v781_v47  ;;  %v725_v53 = vadd.f32 %v1249_v35, %v689_v49  ;;  %v697_v54 = vld [vmem:[#allocation2 + $0xe0] sm:$0xff] }
  0xcd   : > { %v733_v55 = vadd.f32 %v1249_v35, %v697_v54  ;;  %v674_v56 = vld [vmem:[#allocation2 + $0x28] sm:$0xff]  ;;  %663 = vst.msk [vmem:[#allocation2 + $0xe8] sm:$0xff] %vm264_vm3, %v630_v46  ;;  %v576_v57 = vpop.f32.mrf.mxu2  ;;  %v596_v58 = vpop.f32.mrf.mxu3 }
  0xce   : > { %v757_v59 = vmax.f32 %v725_v53, 0.0  ;;  %v710_v60 = vadd.f32 %v1249_v35, %v674_v56  ;;  %v682_v61 = vld [vmem:[#allocation2 + $0x68] sm:$0xff]  ;;  %640 = vst.msk [vmem:[#allocation2 + $0x30] sm:$0xff] %vm264_vm3, %v607_v48  ;;  %v623_v62 = vadd.f32 %v576_v57, %v319_v51  ;;  %v631_v63 = vadd.f32 %v596_v58, %v327_v52  ;;  %v538_v7 = vpop.f32.mrf.mxu0  ;;  %v558_v11 = vpop.f32.mrf.mxu1 }
  0xcf   : > { %v765_v0 = vmax.f32 %v733_v55, 0.0  ;;  %v718_v1 = vadd.f32 %v1249_v35, %v682_v61  ;;  %v690_v2 = vld [vmem:[#allocation2 + $0xa8] sm:$0xff]  ;;  %648 = vst.msk [vmem:[#allocation2 + $0x70] sm:$0xff] %vm264_vm3, %v615_v50  ;;  %v608_v15 = vadd.f32 %v538_v7, %v304_v6  ;;  %v616_v20 = vadd.f32 %v558_v11, %v312_v10 }
  0xd0   : > { %v789_v3 = vpack.c.bf16 %v757_v59, %v757_v59  ;;  %v742_v4 = vmax.f32 %v710_v60, 0.0  ;;  %v726_v5 = vadd.f32 %v1249_v35, %v690_v2  ;;  %656 = vst.msk [vmem:[#allocation2 + $0xb0] sm:$0xff] %vm264_vm3, %v623_v62 }
  0xd1   : > { %v797_v8 = vpack.c.bf16 %v765_v0, %v765_v0  ;;  %v750_v9 = vmax.f32 %v718_v1, 0.0  ;;  %664 = vst.msk [vmem:[#allocation2 + $0xf0] sm:$0xff] %vm264_vm3, %v631_v63 }
  0xd2   : > { %822 = vst.msk [vmem:[%s1262_s4 + $0x50] sm:$0xf] %vm801_vm4, %v789_v3  ;;  %v774_v12 = vpack.c.bf16 %v742_v4, %v742_v4  ;;  %v758_v13 = vmax.f32 %v726_v5, 0.0 }
  0xd3   : > { %830 = vst.msk [vmem:[%s1262_s4 + $0x70] sm:$0xf] %vm801_vm4, %v797_v8  ;;  %v782_v14 = vpack.c.bf16 %v750_v9, %v750_v9 }
  0xd4   : > { %807 = vst.msk [vmem:[%s1262_s4 + $0x14] sm:$0xf] %vm801_vm4, %v774_v12  ;;  %v790_v18 = vpack.c.bf16 %v758_v13, %v758_v13  ;;  %v698_v19 = vld [vmem:[#allocation2 + $0xe8] sm:$0xff] }
  0xd5   : > { %815 = vst.msk [vmem:[%s1262_s4 + $0x34] sm:$0xf] %vm801_vm4, %v782_v14  ;;  %v734_v21 = vadd.f32 %v1249_v35, %v698_v19  ;;  %v675_v22 = vld [vmem:[#allocation2 + $0x30] sm:$0xff]  ;;  %v578_v23 = vpop.f32.mrf.mxu2  ;;  %v598_v24 = vpop.f32.mrf.mxu3 }
  0xd6   : > { %823 = vst.msk [vmem:[%s1262_s4 + $0x54] sm:$0xf] %vm801_vm4, %v790_v18  ;;  %v711_v25 = vadd.f32 %v1249_v35, %v675_v22  ;;  %v683_v26 = vld [vmem:[#allocation2 + $0x70] sm:$0xff]  ;;  %v624_v27 = vadd.f32 %v578_v23, %v320_v16  ;;  %v632_v28 = vadd.f32 %v598_v24, %v328_v17 }
  0xd7   : > { %v766_v29 = vmax.f32 %v734_v21, 0.0  ;;  %v719_v30 = vadd.f32 %v1249_v35, %v683_v26  ;;  %v691_v31 = vld [vmem:[#allocation2 + $0xb0] sm:$0xff]  ;;  %641 = vst.msk [vmem:[#allocation2 + $0x38] sm:$0xff] %vm264_vm3, %v608_v15 }
  0xd8   : > { %v743_v32 = vmax.f32 %v711_v25, 0.0  ;;  %v727_v33 = vadd.f32 %v1249_v35, %v691_v31  ;;  %v699_v34 = vld [vmem:[#allocation2 + $0xf0] sm:$0xff]  ;;  %649 = vst.msk [vmem:[#allocation2 + $0x78] sm:$0xff] %vm264_vm3, %v616_v20 }
  0xd9   : > { %v798_v36 = vpack.c.bf16 %v766_v29, %v766_v29  ;;  %v751_v37 = vmax.f32 %v719_v30, 0.0  ;;  %v735_v38 = vadd.f32 %v1249_v35, %v699_v34  ;;  %657 = vst.msk [vmem:[#allocation2 + $0xb8] sm:$0xff] %vm264_vm3, %v624_v27 }
  0xda   : > { %v775_v39 = vpack.c.bf16 %v743_v32, %v743_v32  ;;  %v759_v40 = vmax.f32 %v727_v33, 0.0  ;;  %665 = vst.msk [vmem:[#allocation2 + $0xf8] sm:$0xff] %vm264_vm3, %v632_v28 }
  0xdb   : > { %831 = vst.msk [vmem:[%s1262_s4 + $0x74] sm:$0xf] %vm801_vm4, %v798_v36  ;;  %v783_v41 = vpack.c.bf16 %v751_v37, %v751_v37  ;;  %v767_v42 = vmax.f32 %v735_v38, 0.0 }
  0xdc   : > { %808 = vst.msk [vmem:[%s1262_s4 + $0x18] sm:$0xf] %vm801_vm4, %v775_v39  ;;  %v791_v43 = vpack.c.bf16 %v759_v40, %v759_v40 }
  0xdd   : > { %816 = vst.msk [vmem:[%s1262_s4 + $0x38] sm:$0xf] %vm801_vm4, %v783_v41  ;;  %v799_v44 = vpack.c.bf16 %v767_v42, %v767_v42 }
  0xde   : > { %824 = vst.msk [vmem:[%s1262_s4 + $0x58] sm:$0xf] %vm801_vm4, %v791_v43  ;;  %v676_v45 = vld [vmem:[#allocation2 + $0x38] sm:$0xff] }
  0xdf   : > { %832 = vst.msk [vmem:[%s1262_s4 + $0x78] sm:$0xf] %vm801_vm4, %v799_v44  ;;  %v712_v46 = vadd.f32 %v1249_v35, %v676_v45  ;;  %v684_v47 = vld [vmem:[#allocation2 + $0x78] sm:$0xff] }
  0xe0   : > { %v720_v48 = vadd.f32 %v1249_v35, %v684_v47  ;;  %v692_v49 = vld [vmem:[#allocation2 + $0xb8] sm:$0xff] }
  0xe1   : > { %v744_v50 = vmax.f32 %v712_v46, 0.0  ;;  %v728_v51 = vadd.f32 %v1249_v35, %v692_v49  ;;  %v700_v52 = vld [vmem:[#allocation2 + $0xf8] sm:$0xff] }
  0xe2   : > { %v752_v53 = vmax.f32 %v720_v48, 0.0  ;;  %v736_v54 = vadd.f32 %v1249_v35, %v700_v52 }
  0xe3   : > { %v776_v55 = vpack.c.bf16 %v744_v50, %v744_v50  ;;  %v760_v56 = vmax.f32 %v728_v51, 0.0 }
  0xe4   : > { %v784_v57 = vpack.c.bf16 %v752_v53, %v752_v53  ;;  %v768_v58 = vmax.f32 %v736_v54, 0.0 }
  0xe5   : > { %809 = vst.msk [vmem:[%s1262_s4 + $0x1c] sm:$0xf] %vm801_vm4, %v776_v55  ;;  %v792_v59 = vpack.c.bf16 %v760_v56, %v760_v56 }
  0xe6   : > { %817 = vst.msk [vmem:[%s1262_s4 + $0x3c] sm:$0xf] %vm801_vm4, %v784_v57  ;;  %v800_v60 = vpack.c.bf16 %v768_v58, %v768_v58 }
  0xe7   : > { %825 = vst.msk [vmem:[%s1262_s4 + $0x5c] sm:$0xf] %vm801_vm4, %v792_v59 }
  0xe8   : > { %833 = vst.msk [vmem:[%s1262_s4 + $0x7c] sm:$0xf] %vm801_vm4, %v800_v60 }
  0xe9 PF: > { %s13_s14 = sadd.s32 1, %s1119_s14   ;;  %s1397_s12 = smov %s1115_s13 }
  0xea   : > { %p10_p5 = scmp.ge.s32.totalorder %s13_s14, 10   ;;  %s1398_s13 = smov %s1400_s15 }
  0xec   :  { %12 = sbr.rel (!%p10_p5) target bundleno = 2 (0x2), region = 76 }

</bundles_post_ra>
